<compile_context>
chip_gen: v5e
topology: v5e:2x2
jax: 0.10.0
libtpu: 0.0.40
codegen_flags: <defaults>
</compile_context>

<pallas_src>
import jax
import jax.numpy as jnp
from jax.experimental import pallas as pl
from jax.experimental.pallas import tpu as pltpu


def _mf_score_kernel(u_ref, v_ref, o_ref):
    # u_ref, v_ref: (K, TB) tiles of gathered user / item embeddings
    #               (K on sublanes, batch on lanes).
    # o_ref:        (1, TB) lane-dense tile of sigmoid(<u, v>) per column.
    u = u_ref[...].astype(jnp.float32)
    v = v_ref[...].astype(jnp.float32)
    s = jnp.sum(u * v, axis=0, keepdims=True)          # (1, TB) sublane reduce
    # Numerically stable sigmoid; exp + approximate reciprocal go to the EUP.
    e = jnp.exp(-jnp.abs(s))
    r = pl.reciprocal(1.0 + e, approx=True)
    o_ref[...] = jnp.where(s >= 0.0, r, e * r)


def _round_up(a, m):
    return ((a + m - 1) // m) * m


def _choose_tiling(batch, k, in_itemsize, budget_bytes=12 << 20, max_tile=65536):
    """Pick (num_tiles, tile_b) so the double-buffered working set fits a
    portable VMEM budget and per-step pipeline overhead is amortized."""
    b128 = _round_up(max(batch, 1), 128)
    # Per output column, double-buffered:
    #   2 inputs x 2 buffers x K x itemsize  +  2 buffers x 4 B (f32 output).
    per_col = 2 * 2 * k * in_itemsize + 2 * 4
    cap = max(128, min(budget_bytes // per_col, max_tile))
    cap = (cap // 128) * 128
    num_tiles = pl.cdiv(b128, cap)
    # Give v7x's two TensorCores something to split when the batch allows it.
    if num_tiles == 1 and b128 >= 256:
        num_tiles = 2
    tile_b = _round_up(pl.cdiv(b128, num_tiles), 128)
    return num_tiles, tile_b


@jax.jit
def mf_forward(W, H, x):
    """MF_BaseModel.forward(x) — returns sigmoid(<W[x[:,0]], H[x[:,1]]>)."""
    B = x.shape[0]
    K = W.shape[1]
    user_idx = x[:, 0].astype(jnp.int32)
    item_idx = x[:, 1].astype(jnp.int32)

    num_tiles, tile_b = _choose_tiling(B, K, W.dtype.itemsize)
    B_pad = num_tiles * tile_b

    # Pad the (cheap) index vectors instead of the gathered (K, B) arrays;
    # padded entries index row 0 (always valid) and are sliced off below.
    if B_pad != B:
        user_idx = jnp.pad(user_idx, (0, B_pad - B))
        item_idx = jnp.pad(item_idx, (0, B_pad - B))

    # Transpose the tiny (N, K) tables once and gather along axis=1 so the
    # XLA gather emits (K, B_pad) directly — no (B, K) -> (K, B) relayout of
    # the large intermediate.
    U_t = jnp.take(W.T, user_idx, axis=1)              # (K, B_pad)
    V_t = jnp.take(H.T, item_idx, axis=1)              # (K, B_pad)

    out = pl.pallas_call(
        _mf_score_kernel,
        out_shape=jax.ShapeDtypeStruct((1, B_pad), jnp.float32),
        grid=(num_tiles,),
        in_specs=[
            pl.BlockSpec((K, tile_b), lambda i: (0, i)),
            pl.BlockSpec((K, tile_b), lambda i: (0, i)),
        ],
        out_specs=pl.BlockSpec((1, tile_b), lambda i: (0, i)),
        compiler_params=pltpu.CompilerParams(
            dimension_semantics=("parallel",)),
    )(U_t, V_t)

    return out[0, :B]                                   # (B,)


def reference_forward(W, H, x):
    U = W[x[:, 0]]
    V = H[x[:, 1]]
    return jax.nn.sigmoid(jnp.sum(U * V, axis=1))


if __name__ == "__main__":
    # Deterministic synthetic parameters (nn.Embedding default init: N(0, 1)).
    num_users = 10
    num_items = 12
    embedding_k = 4

    key = jax.random.PRNGKey(0)
    kW, kH, kU, kI = jax.random.split(key, 4)
    W = jax.random.normal(kW, (num_users, embedding_k), dtype=jnp.float32)
    H = jax.random.normal(kH, (num_items, embedding_k), dtype=jnp.float32)

    ok = True
    for batch in (8, 300):  # small single-tile case + padded multi-tile case
        ku, ki = jax.random.split(jax.random.fold_in(key, batch))
        user_idx = jax.random.randint(ku, (batch,), 0, num_users, dtype=jnp.int32)
        item_idx = jax.random.randint(ki, (batch,), 0, num_items, dtype=jnp.int32)
        x = jnp.stack([user_idx, item_idx], axis=1)     # (B, 2) int32

        out = mf_forward(W, H, x)
        out = jax.block_until_ready(out)

        ref = reference_forward(W, H, x)
        assert out.shape == (batch,), out.shape
        ok &= bool(jnp.allclose(out, ref, atol=2e-3, rtol=2e-3))

    assert ok
    print("KERNEL_OK")
</pallas_src>

<mosaic_0001>
module attributes {stable_mosaic.version = 11 : i64} {
  func.func @_mf_score_kernel(%arg0: i32, %arg1: memref<4x128xf32, #tpu.memory_space<vmem>>, %arg2: memref<4x128xf32, #tpu.memory_space<vmem>>, %arg3: memref<1x128xf32, #tpu.memory_space<vmem>>) attributes {dimension_semantics = [#tpu.dimension_semantics<parallel>], iteration_bounds = array<i64: 1>, scalar_prefetch = 0 : i64, scratch_operands = 0 : i64, tpu.core_type = #tpu.core_type<tc>, window_params = [{transform_indices = @transform_0, window_bounds = array<i64: 4, 128>}, {transform_indices = @transform_1, window_bounds = array<i64: 4, 128>}, {transform_indices = @transform_2, window_bounds = array<i64: 1, 128>}]} {
    %c0 = arith.constant 0 : index
    %c0_0 = arith.constant 0 : index
    %0 = vector.load %arg1[%c0, %c0_0] : memref<4x128xf32, #tpu.memory_space<vmem>>, vector<4x128xf32>
    %c0_1 = arith.constant 0 : index
    %c0_2 = arith.constant 0 : index
    %1 = vector.load %arg2[%c0_1, %c0_2] : memref<4x128xf32, #tpu.memory_space<vmem>>, vector<4x128xf32>
    %2 = arith.mulf %0, %1 : vector<4x128xf32>
    %cst = arith.constant dense<0.000000e+00> : vector<128xf32>
    %3 = vector.multi_reduction <add>, %2, %cst [0] : vector<4x128xf32> to vector<128xf32>
    %4 = vector.shape_cast %3 : vector<128xf32> to vector<1x128xf32>
    %5 = math.absf %4 : vector<1x128xf32>
    %cst_3 = arith.constant 0.000000e+00 : f32
    %6 = vector.broadcast %cst_3 : f32 to vector<1x128xf32>
    %7 = arith.subf %6, %5 : vector<1x128xf32>
    %8 = math.exp %7 : vector<1x128xf32>
    %cst_4 = arith.constant 1.000000e+00 : f32
    %9 = vector.broadcast %cst_4 : f32 to vector<1x128xf32>
    %10 = arith.addf %9, %8 : vector<1x128xf32>
    %11 = tpu.reciprocal %10 {approx = true} : vector<1x128xf32> -> vector<1x128xf32>
    %cst_5 = arith.constant 0.000000e+00 : f32
    %12 = vector.broadcast %cst_5 : f32 to vector<1x128xf32>
    %13 = arith.cmpf oge, %4, %12 : vector<1x128xf32>
    %14 = arith.mulf %8, %11 : vector<1x128xf32>
    %15 = arith.select %13, %11, %14 : vector<1x128xi1>, vector<1x128xf32>
    %c0_6 = arith.constant 0 : index
    %c0_7 = arith.constant 0 : index
    %16 = vector.load %arg3[%c0_6, %c0_7] : memref<1x128xf32, #tpu.memory_space<vmem>>, vector<1x128xf32>
    tpu.vector_store %arg3[%c0_6, %c0_7], %15 {strides = array<i32>} : memref<1x128xf32, #tpu.memory_space<vmem>>, vector<1x128xf32>,
    return
  }
  func.func @transform_0(%arg0: i32) -> (i32, i32) {
    %c0_i32 = arith.constant 0 : i32
    %c0_i32_0 = arith.constant 0 : i32
    return %c0_i32, %arg0 : i32, i32
  }
  func.func @transform_1(%arg0: i32) -> (i32, i32) {
    %c0_i32 = arith.constant 0 : i32
    %c0_i32_0 = arith.constant 0 : i32
    return %c0_i32, %arg0 : i32, i32
  }
  func.func @transform_2(%arg0: i32) -> (i32, i32) {
    %c0_i32 = arith.constant 0 : i32
    %c0_i32_0 = arith.constant 0 : i32
    return %c0_i32, %arg0 : i32, i32
  }
}

</mosaic_0001>

<bundles_post_ra>
// kernel: mf_forward.1
= control target key start
LH: loop header
LB: loop body
LE: loop exit
PB: predicated region body
PF: predicated region fallthrough
CT: control target
= control target key end

     0   :  { %vm14_vm0 = vcmask 1043456   ;;  %s64_s0 = inlined_call_operand.vmem [shape: f32[4,128], index: 0, kind: input, shape index: {}]   ;;  %s65_s1 = inlined_call_operand.vmem [shape: f32[4,128], index: 1, kind: input, shape index: {}]   ;;  %s66_s2 = inlined_call_operand.vmem [shape: f32[1,128], index: 2, kind: output, shape index: {}]  }
   0x1   :  { %v11_v0 = vld [vmem:[%s64_s0] sm:$0xf] }
   0x2   :  { %v12_v1 = vld [vmem:[%s65_s1] sm:$0xf] }
   0x3   :  { %v13_v2 = vmul.f32 %v12_v1, %v11_v0 }
   0x5   :  { %v15_v3 = vsel %vm14_vm0, %v13_v2, 0.0 }
   0x6   :  { %v16_v4 = vrot.slane %v15_v3, 4 }
   0x8   :  { %v17_v5 = vadd.f32 %v16_v4, %v15_v3 }
   0xa   :  { %v18_v6 = vrot.slane %v17_v5, 2 }
   0xc   :  { %v19_v7 = vadd.f32 %v18_v6, %v17_v5 }
   0xe   :  { %v20_v8 = vrot.slane %v19_v7, 1 }
  0x10   :  { %v21_v9 = vadd.f32 %v20_v8, %v19_v7 }
  0x12   :  { %v22_v10 = vand.u32 2147483647, %v21_v9  ;;  %vm28_vm1 = vcmp.ge.f32.partialorder %v21_v9, 0.0 }
  0x14   :  { %v23_v11 = vsub.f32 0.0, %v22_v10 }
  0x16   :  { %v24_v12 = vmul.f32 1.442695, %v23_v11 }
  0x18   :  { %36 = vpow2.f32 %v24_v12 }
  0x1e   :  { %v37_v13 = vpop.eup %36 }
  0x1f   :  { %v26_v14 = vadd.f32 1.0, %v37_v13 }
  0x21   :  { %38 = vrcp.f32 %v26_v14 }
  0x27   :  { %v39_v15 = vpop.eup %38 }
  0x28   :  { %v29_v16 = vmul.f32 %v39_v15, %v37_v13 }
  0x2a   :  { %v30_v17 = vsel %vm28_vm1, %v39_v15, %v29_v16 }
  0x2b   :  { %31 = vst [vmem:[%s66_s2] sm:$0x1] %v30_v17 }

</bundles_post_ra>
